<compile_context>
chip_gen: v5e
topology: v5e:2x2
jax: 0.10.0
libtpu: 0.0.40
codegen_flags: <defaults>
</compile_context>

<pallas_src>
import jax
import jax.numpy as jnp
from jax.experimental import pallas as pl
from jax.experimental.pallas import tpu as pltpu

IN_F = 28
OUT_F = 30

# Rows per grid step for large M (multiple of 8).  Padded f32 tile is
# TM*512 B (last dim pads to 128 lanes); x/other/out double-buffered at
# TM=8192 is ~24 MiB, inside the 32 MiB scoped-VMEM cap on all generations.
TM_MAX = 8192


def _round_up(v, m):
    return ((v + m - 1) // m) * m


def _linear_addc_kernel(x_ref, wt_ref, c_ref, o_ref):
    # Row-broadcast `other` path: c = bias - other, resident (1, OUT_F).
    # x_ref: (TM, IN_F)   wt_ref: (IN_F, OUT_F)   o_ref: (TM, OUT_F)
    y = jnp.dot(x_ref[...], wt_ref[...], preferred_element_type=jnp.float32)
    o_ref[...] = (y + c_ref[...]).astype(o_ref.dtype)


def _linear_sub_kernel(x_ref, wt_ref, b_ref, other_ref, o_ref):
    # Per-token `other` path.
    # other_ref: (TM, OUT_F) or (TM, 1) -- VPU broadcasts the latter.
    y = jnp.dot(x_ref[...], wt_ref[...], preferred_element_type=jnp.float32)
    o_ref[...] = (y + b_ref[...] - other_ref[...]).astype(o_ref.dtype)


def linear_sub(x, weight, bias, other):
    """Computes nn.Linear(28, 30)(x) - other with Pallas.

    x:      (B, S, 28) float32
    weight: (30, 28)   float32 (PyTorch nn.Linear layout)
    bias:   (30,)      float32
    other:  broadcastable with (B, S, 30)
    """
    B, S, K = x.shape
    assert K == IN_F
    M = B * S

    x2 = x.reshape(M, IN_F)
    wT = weight.T                      # (IN_F, OUT_F); one-time, folded by XLA
    b2 = bias.reshape(1, OUT_F)

    other = jnp.asarray(other)
    out3 = (B, S, OUT_F)
    assert jnp.broadcast_shapes(other.shape, out3) == out3, \
        "`other` must be broadcastable to the linear output"
    # Normalize to 3-D (left-pad with broadcast dims).
    other3 = other.reshape((1,) * (3 - other.ndim) + other.shape)
    row_bcast = (other3.shape[0] == 1) and (other3.shape[1] == 1)

    # Tile size: amortize per-step overhead for large M, but keep >= 2 grid
    # steps for moderate M (pipelining + v7x dual-TC sharding).  Multiple of 8.
    if M <= TM_MAX:
        TM = min(M, max(8, _round_up(pl.cdiv(M, 2), 8)))
    else:
        TM = TM_MAX
    grid = (pl.cdiv(M, TM),)

    x_spec = pl.BlockSpec((TM, IN_F), lambda i: (i, 0))       # pipelined
    w_spec = pl.BlockSpec((IN_F, OUT_F), lambda i: (0, 0))    # resident
    out_spec = pl.BlockSpec((TM, OUT_F), lambda i: (i, 0))
    cparams = pltpu.CompilerParams(
        dimension_semantics=("parallel",),
        vmem_limit_bytes=32 << 20,
    )

    if row_bcast:
        # Pre-fuse bias - other into one tiny resident (1, OUT_F) operand.
        c = b2 - jnp.broadcast_to(other3, (1, 1, OUT_F)).reshape(1, OUT_F)
        out = pl.pallas_call(
            _linear_addc_kernel,
            out_shape=jax.ShapeDtypeStruct((M, OUT_F), x.dtype),
            grid=grid,
            in_specs=[
                x_spec,
                w_spec,
                pl.BlockSpec((1, OUT_F), lambda i: (0, 0)),   # c (resident)
            ],
            out_specs=out_spec,
            compiler_params=cparams,
        )(x2, wT, c)
    else:
        # Keep `other` compact along the feature dim when it broadcasts there;
        # only the token dims are expanded to M rows.
        OF = other3.shape[2]                                  # 1 or OUT_F
        other2 = jnp.broadcast_to(other3, (B, S, OF)).reshape(M, OF)
        out = pl.pallas_call(
            _linear_sub_kernel,
            out_shape=jax.ShapeDtypeStruct((M, OUT_F), x.dtype),
            grid=grid,
            in_specs=[
                x_spec,
                w_spec,
                pl.BlockSpec((1, OUT_F), lambda i: (0, 0)),   # bias (resident)
                pl.BlockSpec((TM, OF), lambda i: (i, 0)),     # other (pipelined)
            ],
            out_specs=out_spec,
            compiler_params=cparams,
        )(x2, wT, b2, other2)

    return out.reshape(B, S, OUT_F)


if __name__ == "__main__":
    key = jax.random.PRNGKey(0)
    kx, kw, kb, ko, ko2, ko3 = jax.random.split(key, 6)

    B, S = 2, 8
    x = jax.random.normal(kx, (B, S, IN_F), dtype=jnp.float32)
    other_full = jax.random.normal(ko, (B, S, OUT_F), dtype=jnp.float32)
    other_bcast = jax.random.normal(ko2, (1, 1, OUT_F), dtype=jnp.float32)
    other_feat = jax.random.normal(ko3, (B, S, 1), dtype=jnp.float32)

    # Deterministic nn.Linear(28, 30)-style init: U(-1/sqrt(28), 1/sqrt(28)).
    bound = 1.0 / (IN_F ** 0.5)
    weight = jax.random.uniform(
        kw, (OUT_F, IN_F), minval=-bound, maxval=bound, dtype=jnp.float32
    )
    bias = jax.random.uniform(
        kb, (OUT_F,), minval=-bound, maxval=bound, dtype=jnp.float32
    )

    out_full = linear_sub(x, weight, bias, other_full)    # per-token `other`
    out_bcast = linear_sub(x, weight, bias, other_bcast)  # row-broadcast `other`
    out_feat = linear_sub(x, weight, bias, other_feat)    # feature-broadcast
    jax.block_until_ready((out_full, out_bcast, out_feat))

    # Pure-JAX reference checks.
    ref_lin = jnp.einsum("bsk,ok->bso", x, weight) + bias
    assert out_full.shape == (B, S, OUT_F)
    assert jnp.allclose(out_full, ref_lin - other_full, atol=1e-5, rtol=1e-5)
    assert jnp.allclose(out_bcast, ref_lin - other_bcast, atol=1e-5, rtol=1e-5)
    assert jnp.allclose(out_feat, ref_lin - other_feat, atol=1e-5, rtol=1e-5)

    print("KERNEL_OK")
</pallas_src>

<mosaic_0001>
module attributes {stable_mosaic.version = 11 : i64} {
  func.func @_linear_sub_kernel(%arg0: i32, %arg1: memref<8x28xf32, #tpu.memory_space<vmem>>, %arg2: memref<28x30xf32, #tpu.memory_space<vmem>>, %arg3: memref<1x30xf32, #tpu.memory_space<vmem>>, %arg4: memref<8x30xf32, #tpu.memory_space<vmem>>, %arg5: memref<8x30xf32, #tpu.memory_space<vmem>>) attributes {dimension_semantics = [#tpu.dimension_semantics<parallel>], iteration_bounds = array<i64: 2>, scalar_prefetch = 0 : i64, scratch_operands = 0 : i64, tpu.core_type = #tpu.core_type<tc>, window_params = [{transform_indices = @transform_0, window_bounds = array<i64: 8, 28>}, {pipeline_mode = #tpu.pipeline_mode<synchronous>, transform_indices = @transform_1, window_bounds = array<i64: 28, 30>}, {pipeline_mode = #tpu.pipeline_mode<synchronous>, transform_indices = @transform_2, window_bounds = array<i64: 1, 30>}, {transform_indices = @transform_3, window_bounds = array<i64: 8, 30>}, {transform_indices = @transform_4, window_bounds = array<i64: 8, 30>}]} {
    %c0 = arith.constant 0 : index
    %c0_0 = arith.constant 0 : index
    %0 = vector.load %arg1[%c0, %c0_0] : memref<8x28xf32, #tpu.memory_space<vmem>>, vector<8x28xf32>
    %c0_1 = arith.constant 0 : index
    %c0_2 = arith.constant 0 : index
    %1 = vector.load %arg2[%c0_1, %c0_2] : memref<28x30xf32, #tpu.memory_space<vmem>>, vector<28x30xf32>
    %cst = arith.constant dense<0.000000e+00> : vector<8x30xf32>
    %2 = tpu.matmul %0, %1, %cst {dimension_numbers = #tpu.dot_dimension_numbers<[1], [0], [0], [1], [0, 0, 1, 1], [], []>} : vector<8x28xf32>, vector<28x30xf32>, vector<8x30xf32> -> vector<8x30xf32>
    %c0_3 = arith.constant 0 : index
    %c0_4 = arith.constant 0 : index
    %3 = vector.load %arg3[%c0_3, %c0_4] : memref<1x30xf32, #tpu.memory_space<vmem>>, vector<1x30xf32>
    %4 = vector.broadcast %3 : vector<1x30xf32> to vector<8x30xf32>
    %5 = arith.addf %2, %4 : vector<8x30xf32>
    %c0_5 = arith.constant 0 : index
    %c0_6 = arith.constant 0 : index
    %6 = vector.load %arg4[%c0_5, %c0_6] : memref<8x30xf32, #tpu.memory_space<vmem>>, vector<8x30xf32>
    %7 = arith.subf %5, %6 : vector<8x30xf32>
    %c0_7 = arith.constant 0 : index
    %c0_8 = arith.constant 0 : index
    %8 = vector.load %arg5[%c0_7, %c0_8] : memref<8x30xf32, #tpu.memory_space<vmem>>, vector<8x30xf32>
    tpu.vector_store %arg5[%c0_7, %c0_8], %7 {strides = array<i32>} : memref<8x30xf32, #tpu.memory_space<vmem>>, vector<8x30xf32>,
    return
  }
  func.func @transform_0(%arg0: i32) -> (i32, i32) {
    %c0_i32 = arith.constant 0 : i32
    %c0_i32_0 = arith.constant 0 : i32
    return %arg0, %c0_i32 : i32, i32
  }
  func.func @transform_1(%arg0: i32) -> (i32, i32) {
    %c0_i32 = arith.constant 0 : i32
    %c0_i32_0 = arith.constant 0 : i32
    %c0_i32_1 = arith.constant 0 : i32
    return %c0_i32, %c0_i32_0 : i32, i32
  }
  func.func @transform_2(%arg0: i32) -> (i32, i32) {
    %c0_i32 = arith.constant 0 : i32
    %c0_i32_0 = arith.constant 0 : i32
    %c0_i32_1 = arith.constant 0 : i32
    return %c0_i32, %c0_i32_0 : i32, i32
  }
  func.func @transform_3(%arg0: i32) -> (i32, i32) {
    %c0_i32 = arith.constant 0 : i32
    %c0_i32_0 = arith.constant 0 : i32
    return %arg0, %c0_i32 : i32, i32
  }
  func.func @transform_4(%arg0: i32) -> (i32, i32) {
    %c0_i32 = arith.constant 0 : i32
    %c0_i32_0 = arith.constant 0 : i32
    return %arg0, %c0_i32 : i32, i32
  }
}

</mosaic_0001>

<bundles_post_ra>
// kernel: tpu_custom_call.1
= control target key start
LH: loop header
LB: loop body
LE: loop exit
PB: predicated region body
PF: predicated region fallthrough
CT: control target
= control target key end

     0   :  { %s891_s0 = inlined_call_operand.hbm [shape: f32[16,28], index: 0, kind: input, shape index: {}]   ;;  %s892_s1 = inlined_call_operand.hbm [shape: f32[28,30], index: 1, kind: input, shape index: {}]   ;;  %s893_s2 = inlined_call_operand.vmem [shape: f32[1,30], index: 2, kind: input, shape index: {}]   ;;  %s894_s3 = inlined_call_operand.hbm [shape: f32[16,30], index: 3, kind: input, shape index: {}]   ;;  %s895_s4 = inlined_call_operand.hbm [shape: f32[16,30], index: 4, kind: output, shape index: {}]  }
   0x1   :  { %897 = sst [smem:[#allocation13_spill]] %s891_s0 }
   0x2   :  { %898 = sst [smem:[#allocation14_spill]] %s892_s1 }
   0x3   :  { %9 = vsyncpa [#allocation3], 0 }
   0x4   :  { %11 = vsyncpa [#allocation3 + $0x1], 0 }
   0x5   :  { %12 = vsyncpa [#allocation6], 0 }
   0x6   :  { %13 = vsyncpa [#allocation4], 0 }
   0x7   :  { %15 = vsyncpa [#allocation4 + $0x1], 0  ;;  %s703_s15 = smov 0   ;;  %s705_s16 = smov 0  }
   0x8   :  { %s707_s17 = smov 0   ;;  %s709_s18 = smov 0  }
   0x9 LB: > { %s724_s19 = sadd.s32 4294967295, %s673_s18   ;;  %s425_s20 = sadd.s32 4294967294, %s673_s18   ;;  %s673_s18 = sphi %s709_s18, %s913_s18   ;;  %s669_s17 = sphi %s707_s17, %s912_s17   ;;  %s665_s16 = sphi %s705_s16, %s911_s16   ;;  %s661_s15 = sphi %s703_s15, %s910_s15  }
   0xa   : > { %s728_s21 = sadd.s32 1, %s673_s18   ;;  %s28_s22 = sadd.s32 1, %s669_s17 }
   0xb   : > { %s25_s23 = ssub.s32 %s673_s18, %s728_s21  ;;  %p35_p0 = scmp.ne.s32.totalorder %s669_s17, %s665_s16 }
   0xc   : > { %p26_p1 = scmp.eq.s32.totalorder %s25_s23, 0  ;;  %p36_p2 = scmp.eq.s32.totalorder %s673_s18, 0 }
   0xd   : > { %p41_p3 = scmp.ne.s32.totalorder %s665_s16, %s661_s15  ;;  %p133_p4 = scmp.eq.s32.totalorder %s724_s19, 1 }
   0xe   : > { %s740_s24 = scalar_select %p26_p1, %s669_s17, %s28_s22  }
   0xf   : > { %p742_p5 = por %p133_p4, %p35_p0  ;;  %p139_p6 = scmp.eq.s32.totalorder %s425_s20, 1 }
  0x10   : > { %p746_p7 = por %p36_p2, %p35_p0  ;;  %p470_p10 = scmp.lt.s32.totalorder %s673_s18, 2 }
  0x11   : > { %p754_p9 = por %p139_p6, %p41_p3  ;;  %s176_s28 = sand.u32 1, %s673_s18  }
  0x12   : > { %s178_s29 = sand.u32 1, %s669_s17   ;;  %s430_s5 = sshll.u32 %s673_s18, 3 }
  0x13   : > { %s761_s30 = sshll.u32 %s178_s29, 3  ;;  %s902_s0 = sld [smem:[#allocation13_spill]] }
  0x14   : > { %s180_s10 = scalar_lea.vmem [#allocation2], %s761_s30  ;;  %p770_p11 = pnand %p470_p10, %p746_p7 }
  0x15   : > { %s188_s11 = sshll.u32 %s180_s10, 4  ;;  %p896_p12 = scmp.eq.s32.totalorder %s724_s19, 0  ;;  %s189_s11 = int_to_ptr.vmem [resolvable:$true] %s188_s11 }
  0x16   : > { %p426_p13 = scmp.ge.s32.totalorder %s673_s18, 1  ;;  %s776_s13 = scalar_lea.sflag [#allocation3], %s176_s28 }
  0x17   : > { %p513_p1 = pneg %p770_p11 }
  0x19   : > { %s184_s8 = scalar_lea.hbm %s902_s0, %s430_s5  ;;  %s516_s26 = scalar_lea.hbm %s902_s0, 16 }
  0x1a   : > { %s186_s9 = sshll.u32 %s184_s8, 4  ;;  %s187_s9 = int_to_ptr.hbm [resolvable:$true] %s186_s9 }
  0x1b   : > { %s509_s14 = sshra.s32 %s187_s9, 4  ;;  %s510_s14 = int_to_ptr.hbm [resolvable:$true] %s509_s14 }
  0x1c   : > { %s511_s20 = scalar_lea.hbm %s510_s14, 8  ;;  %p517_p6 = scmp.lt.s32.totalorder %s510_s14, %s902_s0 }
  0x1d   : > { %p512_p0 = scmp.ne.s32.totalorder %s510_s14, %s511_s20  ;;  %p518_p7 = scmp.lt.s32.totalorder %s516_s26, %s511_s20 }
  0x1f   : > { %p514_p2 = pnand %p513_p1, %p512_p0  ;;  %p519_p10 = por %p518_p7, %p517_p6 }
  0x21   : > { %p515_p4 = pneg %p514_p2 }
  0x23   : > { %p520_p8 = pnand %p519_p10, %p515_p4 }
  0x25   : > { %523 = shalt.err (!%p520_p8)
}
  0x26   : > { %461 = dma.hbm_to_vmem [thread:$0]  (!%p770_p11), %s187_s9, 128, %s189_s11, %s776_s13  }
  0x27   : > { %p797_p0 = por %p896_p12, %p41_p3  ;;  %p146_p2 = scmp.lt.s32.totalorder %s673_s18, 3 }
  0x28   : > { %s905_s1 = sld [smem:[#allocation14_spill]]  ;;  %s203_s22 = scalar_lea.hbm %s894_s3, %s430_s5 }
  0x29   : > { %p810_p8 = pnand %p426_p13, %p146_p2  ;;  %s675_s9 = smov [#allocation5]  }
  0x2a   : > { %s159_s11 = sshll.u32 %s675_s9, 4  ;;  %s205_s26 = sshll.u32 %s203_s22, 4  ;;  %s160_s11 = int_to_ptr.vmem [resolvable:$true] %s159_s11  ;;  %s206_s26 = int_to_ptr.hbm [resolvable:$true] %s205_s26 }
  0x2b   : > { %p454_p3 = pneg %p810_p8  ;;  %s199_s29 = scalar_lea.vmem [#allocation7], %s761_s30 }
  0x2c   : > { %s207_s6 = sshll.u32 %s199_s29, 4  ;;  %s676_s5 = smov 128   ;;  %s208_s6 = int_to_ptr.vmem [resolvable:$true] %s207_s6 }
  0x2d   : > { %p455_p4 = pnand %p454_p3, %p896_p12  ;;  %s677_s7 = smov 8  }
  0x2e   : > { %s157_s10 = sshll.u32 %s905_s1, 4  ;;  %s569_s8 = sshra.s32 %s206_s26, 4  ;;  %s158_s10 = int_to_ptr.hbm [resolvable:$true] %s157_s10  ;;  %s570_s8 = int_to_ptr.hbm [resolvable:$true] %s569_s8 }
  0x2f   : > { %457 = dma.hbm_to_vmem [thread:$0]  (!%p455_p4), %s158_s10, 512, %s160_s11, [#allocation6], %s676_s5, %s676_s5, %s677_s7  }
  0x30   : > { %s571_s14 = scalar_lea.hbm %s570_s8, 8  ;;  %s576_s22 = scalar_lea.hbm %s894_s3, 16 }
  0x31   : > { %p572_p13 = scmp.ne.s32.totalorder %s570_s8, %s571_s14  ;;  %p577_p10 = scmp.lt.s32.totalorder %s570_s8, %s894_s3 }
  0x32   : > { %p578_p2 = scmp.lt.s32.totalorder %s576_s22, %s571_s14 }
  0x33   : > { %p574_p6 = pnand %p572_p13, %p513_p1 }
  0x34   : > { %p579_p3 = por %p578_p2, %p577_p10 }
  0x35   : > { %p575_p7 = pneg %p574_p6 }
  0x37   : > { %p580_p12 = pnand %p579_p3, %p575_p7 }
  0x39   : > { %583 = shalt.err (!%p580_p12)
}
  0x3a   : > { %464 = dma.hbm_to_vmem [thread:$0]  (!%p770_p11), %s206_s26, 128, %s208_s6, %s776_s13  }
  0x3b   : > { %216 = sbr.rel (%p810_p8) target bundleno = 212 (0xd4), region = 36  ;;  %s218_s30 = sand.u32 (!%p810_p8), 1, %s724_s19  }
  0x3c   : > { %s220_s10 = sand.u32 (!%p810_p8), 1, %s665_s16   ;;  %s219_s1 = scalar_lea.sflag (!%p810_p8), [#allocation3], %s218_s30 }
  0x3d   : > { %s837_s0 = sshll.u32 (!%p810_p8), %s220_s10, 3 }
  0x3e   : > { %s222_s11 = scalar_lea.vmem (!%p810_p8), [#allocation2], %s837_s0 }
  0x40   : > { %644 = dma.done.wait (%p797_p0), %s219_s1, 128  }
  0x41   : > { %646 = vsyncadd (%p797_p0), %s219_s1, 4294967168  ;;  %p907_p11 = scmp.eq.s32.totalorder %s724_s19, 0 }
  0x43   : > { %648 = dma.done.wait (%p907_p11), [#allocation6], 512   ;;  %p908_p12 = pmov %p907_p11 }
  0x44   : > { %s237_s12 = scalar_lea.vmem [#allocation7], %s837_s0 }
  0x45   : > { %650 = vsyncadd (%p908_p12), [#allocation6], 4294966784 }
  0x46   : > { %652 = dma.done.wait (%p797_p0), %s219_s1, 128  }
  0x47   : > { %654 = vsyncadd (%p797_p0), %s219_s1, 4294967168  ;;  %vm281_vm0 = vcmask 1043456   ;;  %v272_v0 = vld [vmem:[#allocation5 + $0x18] sm:$0xf]  ;;  %v271_v1 = vld [vmem:[#allocation5 + $0x10] sm:$0xff]  ;;  %vm277_vm1 = vcmask 228352  }
  0x48   : > { %438 = vmatpush.msk.msra.mxu0 %vm281_vm0, %v272_v0  ;;  %v270_v2 = vld [vmem:[#allocation5 + $0x8] sm:$0xff]  ;;  %v269_v3 = vld [vmem:[#allocation5] sm:$0xff]  ;;  %v268_v4 = vld [vmem:[%s222_s11] sm:$0xff]  ;;  %s441_s13 = sshll.u32 %s724_s19, 3  ;;  %s267_s5 = scalar_lea.vmem [#allocation8], %s837_s0  ;;  %vm307_vm2 = vcmask 244736  }
  0x49   : > { %v508_v5 = vld [vmem:[%s893_s2] ss:$0 sm:$0xff]  ;;  %s320_s6 = scalar_lea.hbm %s895_s4, %s441_s13  ;;  %v305_v7 = vld [vmem:[%s237_s12] sm:$0xff]  ;;  %s322_s7 = sshll.u32 %s267_s5, 4  ;;  %s323_s7 = int_to_ptr.vmem [resolvable:$true] %s322_s7 }
  0x4a   : > { %298 = vmatpush.msra.mxu0 %v271_v1  ;;  %s324_s8 = sshll.u32 %s320_s6, 4  ;;  %s310_s19 = scalar_lea.sflag [#allocation4], %s220_s10  ;;  %s325_s8 = int_to_ptr.hbm [resolvable:$true] %s324_s8 }
  0x4b   : > { %s613_s14 = sshra.s32 %s325_s8, 4  ;;  %s619_s30 = scalar_lea.hbm %s895_s4, 16  ;;  %s614_s14 = int_to_ptr.hbm [resolvable:$true] %s613_s14 }
  0x4c   : > { %299 = vmatpush.msra.mxu0 %v270_v2  ;;  %s615_s20 = scalar_lea.hbm %s614_s14, 8  ;;  %p620_p4 = scmp.lt.s32.totalorder %s614_s14, %s895_s4 }
  0x4d   : > { %p616_p1 = scmp.ne.s32.totalorder %s614_s14, %s615_s20  ;;  %p621_p13 = scmp.lt.s32.totalorder %s619_s30, %s615_s20 }
  0x4e   : > { %300 = vmatpush.msra.mxu0 %v269_v3 }
  0x4f   : > { %439 = vmatmul.msk.f32.vlgmr.msra.gmra.mxu0 %vm277_vm1, %v268_v4  ;;  %p617_p0 = pnand %p616_p1, %p742_p5  ;;  %p622_p6 = por %p621_p13, %p620_p4 }
  0x51   : > { %p618_p8 = pneg %p617_p0 }
  0x53   : > { %p623_p7 = pnand %p622_p6, %p618_p8 }
  0xcc   : > { %v302_v6 = vpop.f32.mrf.mxu0 }
  0xcd   : > { %v303_v8 = vadd.f32 %v508_v5, %v302_v6 }
  0xcf   : > { %v306_v9 = vsub.f32 %v303_v8, %v305_v7 }
  0xd1   : > { %308 = vst.msk [vmem:[%s267_s5] sm:$0xff] %vm307_vm2, %v306_v9 }
  0xd2   : > { %626 = shalt.err (!%p623_p7)
}
  0xd3   : > { %452 = dma.vmem_to_hbm [thread:$0]  (%p742_p5), %s323_s7, 128, %s325_s8, %s310_s19  }
  0xd4 PF: > { %s336_s10 = sand.u32 1, %s661_s15   ;;  %p909_p10 = scmp.ge.s32.totalorder %s673_s18, 2 }
  0xd5   : > { %s337_s11 = scalar_lea.sflag [#allocation4], %s336_s10 }
  0xd6   : > { %p466_p2 = pnand %p909_p10, %p754_p9 }
  0xd8   : > { %p467_p3 = pneg %p466_p2 }
  0xda   : > { %656 = dma.done.wait (%p467_p3), %s337_s11, 128  }
  0xdb   : > { %658 = vsyncadd (%p467_p3), %s337_s11, 4294967168  ;;  %p18_p11 = scmp.ge.s32.totalorder %s728_s21, 4   ;;  %s910_s15 = smov %s665_s16 }
  0xdc   : > { %s911_s16 = smov %s669_s17  ;;  %s912_s17 = smov %s740_s24 }
  0xdd   : > { %s913_s18 = smov %s728_s21  ;;  %20 = sbr.rel (!%p18_p11) target bundleno = 9 (0x9), region = 96 }
  0xe2   :  { %343 = vsyncpa [#allocation3], 1 }
  0xe3   :  { %345 = vsyncpa [#allocation3 + $0x1], 1 }
  0xe4   :  { %346 = vsyncpa [#allocation6], 1 }
  0xe5   :  { %347 = vsyncpa [#allocation4], 1 }
  0xe6   :  { %349 = vsyncpa [#allocation4 + $0x1], 1 }

</bundles_post_ra>
